<compile_context>
chip_gen: v7x
topology: tpu7x:2x2x1
jax: 0.10.0
libtpu: 0.0.40
codegen_flags: <defaults>
</compile_context>

<pallas_src>
import jax
import jax.numpy as jnp
from jax.experimental import pallas as pl
from jax.experimental.pallas import tpu as pltpu

# Synthetic MOS-predictor dimensions (small demo sizes).
B = 2          # batch
D = 128        # frame size (lane axis)
F = 512        # frames per waveform  -> T = F * D = 65536 samples (~1.4 s @48k)
H = 128        # hidden width of the synthetic scorer
FT = 256       # frames per grid step (M rows per MXU matmul)
SUB = 8        # sublane partial-sum rows kept in the accumulator


def utmos_feat_kernel(frames_ref, w1_ref, out_ref, acc_ref):
    # frames_ref: (1, FT, D) bf16    w1_ref: (D, H) bf16 (resident)
    # out_ref:    (1, SUB, H) f32    acc_ref: (SUB, H) f32 VMEM scratch
    k = pl.program_id(1)

    @pl.when(k == 0)
    def _init():
        acc_ref[...] = jnp.zeros_like(acc_ref)

    ft = frames_ref.shape[1]
    h = w1_ref.shape[1]

    # --- synthetic MOS feature extractor (stand-in for UTMOSV2) -----------
    x = frames_ref[0]                                         # (FT, D) bf16
    feats = jnp.dot(x, w1_ref[...],
                    preferred_element_type=jnp.float32)       # (FT, H) f32, MXU
    feats = jnp.maximum(feats, 0.0)                           # ReLU (VPU)
    # Frame-axis partial reduce: (FT, H) -> (SUB, H).  This is elementwise
    # addition of the FT//SUB stacked vregs (no cross-sublane XLU traffic)
    # and keeps the accumulator a full unmasked (8, 128) tile.
    acc_ref[...] += feats.reshape(ft // SUB, SUB, h).sum(axis=0)

    @pl.when(k == pl.num_programs(1) - 1)
    def _write():
        out_ref[0] = acc_ref[...]


def utmos_loss(gen_wav, w1, w2, frames_per_tile=FT):
    """gen_wav: (B, 1, T) or (B, T) float32 waveform. Returns scalar loss."""
    if gen_wav.ndim == 3:
        gen_wav = gen_wav[:, 0, :]                 # squeeze(1), as in the module
    b, t = gen_wav.shape
    assert t % D == 0, "waveform length must be a multiple of the frame size"
    f = t // D
    assert f % frames_per_tile == 0, "frame count must tile evenly"
    n_tiles = f // frames_per_tile

    # bf16 stream halves HBM traffic; accumulation stays f32 in-kernel.
    frames = gen_wav.reshape(b, f, D).astype(jnp.bfloat16)
    w1_bf = w1.astype(jnp.bfloat16)

    partials = pl.pallas_call(
        utmos_feat_kernel,
        out_shape=jax.ShapeDtypeStruct((b, SUB, H), jnp.float32),
        grid=(b, n_tiles),
        in_specs=[
            # frames: one batch row per (parallel) step, FT frames per
            # (arbitrary) reduction step, lane axis full.
            pl.BlockSpec((1, frames_per_tile, D), lambda bi, k: (bi, k, 0)),
            # w1 resident across the whole grid.
            pl.BlockSpec((D, H), lambda bi, k: (0, 0)),
        ],
        # Per-batch sublane partial sums; reduced + scored outside the kernel.
        out_specs=pl.BlockSpec((1, SUB, H), lambda bi, k: (bi, 0, 0)),
        scratch_shapes=[pltpu.VMEM((SUB, H), jnp.float32)],
        compiler_params=pltpu.CompilerParams(
            # batch axis parallel (v7x megacore), frame axis is the reduction.
            dimension_semantics=("parallel", "arbitrary"),
        ),
    )(frames, w1_bf)

    # --- epilogue in plain JAX (runs once, O(B*H)) -------------------------
    pooled = partials.sum(axis=1) / jnp.float32(f)            # (B, H) temporal mean
    mos = jnp.sum(pooled * w2, axis=-1)                       # (B,) linear head
    # --- UTMOSLoss.forward semantics ---------------------------------------
    normalized = 5.0 * jax.nn.sigmoid(mos - 2.5)
    return -jnp.mean(normalized)


def make_params():
    """Deterministic synthetic scorer weights (not a checkpoint load)."""
    # TODO(synk): real UTMOSV2 (SSL encoder + spec backbones) is not
    # reproducible here; these deterministic weights stand in for it.
    k1, k2 = jax.random.split(jax.random.PRNGKey(42))
    w1 = jax.random.normal(k1, (D, H), dtype=jnp.float32) / jnp.sqrt(D)
    w2 = jax.random.normal(k2, (1, H), dtype=jnp.float32) / jnp.sqrt(H)
    return w1, w2


if __name__ == "__main__":
    key = jax.random.PRNGKey(0)
    T = F * D
    # gen_wav like PyTorch: (batch, channel=1, time)
    gen_wav = jax.random.normal(key, (B, 1, T), dtype=jnp.float32)
    w1, w2 = make_params()

    loss = utmos_loss(gen_wav, w1, w2)
    loss = jax.block_until_ready(loss)

    # Pure-JAX reference of the same synthetic forward pass (same bf16 casts).
    wav2d = gen_wav[:, 0, :]
    frames_ref = wav2d.reshape(B, F, D).astype(jnp.bfloat16).astype(jnp.float32)
    w1_ref = w1.astype(jnp.bfloat16).astype(jnp.float32)
    feats = jnp.maximum(jnp.einsum("bfd,dh->bfh", frames_ref, w1_ref), 0.0)
    pooled = jnp.mean(feats, axis=1)                          # (B, H)
    mos_ref = jnp.sum(pooled * w2, axis=-1)                   # (B,)
    ref = -jnp.mean(5.0 * jax.nn.sigmoid(mos_ref - 2.5))
    assert jnp.allclose(loss, ref, atol=1e-4, rtol=1e-4), (loss, ref)

    print("KERNEL_OK")
</pallas_src>

<mosaic_0001>
module attributes {stable_mosaic.version = 11 : i64} {
  func.func @utmos_feat_kernel(%arg0: i32, %arg1: i32, %arg2: memref<1x256x128xbf16, #tpu.memory_space<vmem>>, %arg3: memref<128x128xbf16, #tpu.memory_space<vmem>>, %arg4: memref<1x8x128xf32, #tpu.memory_space<vmem>>, %arg5: memref<8x128xf32, #tpu.memory_space<vmem>>) attributes {dimension_semantics = [#tpu.dimension_semantics<parallel>, #tpu.dimension_semantics<arbitrary>], iteration_bounds = array<i64: 2, 2>, scalar_prefetch = 0 : i64, scratch_operands = 1 : i64, tpu.core_type = #tpu.core_type<tc>, window_params = [{transform_indices = @transform_0, window_bounds = array<i64: 1, 256, 128>}, {pipeline_mode = #tpu.pipeline_mode<synchronous>, transform_indices = @transform_1, window_bounds = array<i64: 128, 128>}, {transform_indices = @transform_2, window_bounds = array<i64: 1, 8, 128>}]} {
    %c0_i32 = arith.constant 0 : i32
    %0 = arith.cmpi eq, %arg1, %c0_i32 : i32
    %1 = arith.extui %0 : i1 to i32
    %c0_i32_0 = arith.constant 0 : i32
    %2 = arith.cmpi ne, %1, %c0_i32_0 : i32
    scf.if %2 {
      %cst_12 = arith.constant 0.000000e+00 : f32
      %17 = vector.broadcast %cst_12 : f32 to vector<8x128xf32>
      %c0_13 = arith.constant 0 : index
      %c0_14 = arith.constant 0 : index
      %18 = vector.load %arg5[%c0_13, %c0_14] : memref<8x128xf32, #tpu.memory_space<vmem>>, vector<8x128xf32>
      tpu.vector_store %arg5[%c0_13, %c0_14], %17 {strides = array<i32>} : memref<8x128xf32, #tpu.memory_space<vmem>>, vector<8x128xf32>,
    } else {
    }
    %c0 = arith.constant 0 : index
    %c0_1 = arith.constant 0 : index
    %c0_2 = arith.constant 0 : index
    %3 = vector.load %arg2[%c0, %c0_1, %c0_2] : memref<1x256x128xbf16, #tpu.memory_space<vmem>>, vector<1x256x128xbf16>
    %4 = vector.shape_cast %3 : vector<1x256x128xbf16> to vector<256x128xbf16>
    %c0_3 = arith.constant 0 : index
    %c0_4 = arith.constant 0 : index
    %5 = vector.load %arg3[%c0_3, %c0_4] : memref<128x128xbf16, #tpu.memory_space<vmem>>, vector<128x128xbf16>
    %cst = arith.constant dense<0.000000e+00> : vector<256x128xf32>
    %6 = tpu.matmul %4, %5, %cst {dimension_numbers = #tpu.dot_dimension_numbers<[1], [0], [0], [1], [0, 0, 1, 1], [], []>} : vector<256x128xbf16>, vector<128x128xbf16>, vector<256x128xf32> -> vector<256x128xf32>
    %cst_5 = arith.constant 0.000000e+00 : f32
    %7 = vector.broadcast %cst_5 : f32 to vector<256x128xf32>
    %8 = arith.maximumf %6, %7 : vector<256x128xf32>
    %c0_6 = arith.constant 0 : index
    %c0_7 = arith.constant 0 : index
    %9 = vector.load %arg5[%c0_6, %c0_7] : memref<8x128xf32, #tpu.memory_space<vmem>>, vector<8x128xf32>
    %10 = vector.shape_cast %8 : vector<256x128xf32> to vector<32x8x128xf32>
    %cst_8 = arith.constant dense<0.000000e+00> : vector<8x128xf32>
    %11 = vector.multi_reduction <add>, %10, %cst_8 [0] : vector<32x8x128xf32> to vector<8x128xf32>
    %12 = arith.addf %9, %11 : vector<8x128xf32>
    %c0_9 = arith.constant 0 : index
    %c0_10 = arith.constant 0 : index
    %13 = vector.load %arg5[%c0_9, %c0_10] : memref<8x128xf32, #tpu.memory_space<vmem>>, vector<8x128xf32>
    tpu.vector_store %arg5[%c0_9, %c0_10], %12 {strides = array<i32>} : memref<8x128xf32, #tpu.memory_space<vmem>>, vector<8x128xf32>,
    %c1_i32 = arith.constant 1 : i32
    %14 = arith.cmpi eq, %arg1, %c1_i32 : i32
    %15 = arith.extui %14 : i1 to i32
    %c0_i32_11 = arith.constant 0 : i32
    %16 = arith.cmpi ne, %15, %c0_i32_11 : i32
    scf.if %16 {
      %c0_12 = arith.constant 0 : index
      %c0_13 = arith.constant 0 : index
      %17 = vector.load %arg5[%c0_12, %c0_13] : memref<8x128xf32, #tpu.memory_space<vmem>>, vector<8x128xf32>
      %c0_14 = arith.constant 0 : index
      %c0_15 = arith.constant 0 : index
      %c0_16 = arith.constant 0 : index
      %18 = vector.load %arg4[%c0_14, %c0_15, %c0_16] : memref<1x8x128xf32, #tpu.memory_space<vmem>>, vector<1x8x128xf32>
      %19 = vector.shape_cast %18 : vector<1x8x128xf32> to vector<8x128xf32>
      %20 = vector.shape_cast %17 : vector<8x128xf32> to vector<1x8x128xf32>
      tpu.vector_store %arg4[%c0_14, %c0_15, %c0_16], %20 {strides = array<i32>} : memref<1x8x128xf32, #tpu.memory_space<vmem>>, vector<1x8x128xf32>,
    } else {
    }
    return
  }
  func.func @transform_0(%arg0: i32, %arg1: i32) -> (i32, i32, i32) {
    %c0_i32 = arith.constant 0 : i32
    %c0_i32_0 = arith.constant 0 : i32
    return %arg0, %arg1, %c0_i32 : i32, i32, i32
  }
  func.func @transform_1(%arg0: i32, %arg1: i32) -> (i32, i32) {
    %c0_i32 = arith.constant 0 : i32
    %c0_i32_0 = arith.constant 0 : i32
    %c0_i32_1 = arith.constant 0 : i32
    return %c0_i32, %c0_i32_0 : i32, i32
  }
  func.func @transform_2(%arg0: i32, %arg1: i32) -> (i32, i32, i32) {
    %c0_i32 = arith.constant 0 : i32
    %c0_i32_0 = arith.constant 0 : i32
    %c0_i32_1 = arith.constant 0 : i32
    return %arg0, %c0_i32, %c0_i32_0 : i32, i32, i32
  }
}

</mosaic_0001>

<bundles_post_ra>
// kernel: tpu_custom_call.1
= control target key start
LH: loop header
LB: loop body
LE: loop exit
PB: predicated region body
PF: predicated region fallthrough
CT: control target
= control target key end

     0   :  { %s1512_s0 = inlined_call_operand.hbm [shape: bf16[2,512,128], index: 0, kind: input, shape index: {}]   ;;  %s1513_s1 = inlined_call_operand.hbm [shape: bf16[128,128], index: 1, kind: input, shape index: {}]   ;;  %s1514_s2 = inlined_call_operand.hbm [shape: f32[2,8,128], index: 2, kind: output, shape index: {}]  }
   0x1   :  { %1527 = sst [smem:[#allocation16_spill]] %s1513_s1 }
   0x2   :  { %1528 = sst [smem:[#allocation17_spill]] %s1514_s2 }
   0x3   :  { %7 = vsyncpa [#allocation4], 0 }
   0x4   :  { %9 = vsyncpa [#allocation4 + $0x1], 0 }
   0x5   :  { %10 = vsyncpa [#allocation7], 0 }
   0x6   :  { %11 = vsyncpa [#allocation5], 0 }
   0x7   :  { %13 = vsyncpa [#allocation5 + $0x1], 0  ;;  %s1211_s9 = smov 0   ;;  %s1213_s10 = smov 0  }
   0x8   :  { %s1215_s11 = smov 0   ;;  %s1217_s12 = smov 0  }
   0x9   :  { %s1219_s13 = smov 0   ;;  %s1221_s14 = smov 0  }
   0xa   :  { %s1223_s15 = smov 0   ;;  %s1225_s16 = smov 0  }
   0xb   :  { %s1227_s17 = smov 0   ;;  %s1229_s18 = smov 0  }
   0xc   :  { %s1231_s19 = smov 0  }
   0xd LB: > { %1529 = sst [smem:[#allocation12_spill]] %s1148_s9  ;;  %s733_s20 = sadd.s32 4294967295, %s1188_s19   ;;  %s1188_s19 = sphi %s1231_s19, %s19_s19   ;;  %s1184_s18 = sphi %s1229_s18, %s1563_s18   ;;  %s1180_s17 = sphi %s1227_s17, %s1562_s17   ;;  %s1176_s16 = sphi %s1225_s16, %s1561_s16   ;;  %s1172_s15 = sphi %s1223_s15, %s1560_s15   ;;  %s1168_s14 = sphi %s1221_s14, %s1559_s14   ;;  %s1164_s13 = sphi %s1219_s13, %s1558_s13   ;;  %s1160_s12 = sphi %s1217_s12, %s1557_s12   ;;  %s1156_s11 = sphi %s1215_s11, %s1556_s11   ;;  %s1152_s10 = sphi %s1213_s10, %s1555_s10   ;;  %s1148_s9 = sphi %s1211_s9, %s1554_s9  }
   0xe   : > { %s734_s21 = sadd.s32 4294967294, %s1188_s19   ;;  %p53_p0 = scmp.ne.s32.totalorder %s1164_s13, %s1160_s12 }
   0xf   : > { %p1267_p1 = scmp.eq.s32.totalorder %s733_s20, 0  ;;  %s87_s23 = sadd.s32 1, %s1156_s11 }
  0x10   : > { %p97_p2 = scmp.ne.s32.totalorder %s1156_s11, %s1152_s10  ;;  %p98_p4 = scmp.eq.s32.totalorder %s733_s20, 3 }
  0x11   : > { %s1530_s22 = scalar_select %p1267_p1, 1, 0 }
  0x12   : > { %p1276_p3 = por %p1267_p1, %p53_p0  ;;  %p103_p5 = scmp.ne.s32.totalorder %s1152_s10, %s1148_s9 }
  0x13   : > { %p104_p6 = scmp.eq.s32.totalorder %s734_s21, 3  ;;  %p1282_p7 = por %p98_p4, %p97_p2 }
  0x14   : > { %s1531_s24 = scalar_select %p1276_p3, 1, 0 }
  0x15   : > { %s1532_s25 = scalar_select %p1282_p7, 1, 0 }
  0x16   : > { %p735_p8 = scmp.ge.s32.totalorder %s1188_s19, 1  ;;  %p1287_p9 = por %p104_p6, %p103_p5 }
  0x17   : > { %p111_p10 = scmp.lt.s32.totalorder %s1188_s19, 5  ;;  %s1190_s28 = smov [#allocation6]  }
  0x18   : > { %s1533_s26 = scalar_select %p1287_p9, 1, 0 }
  0x19   : > { %p1292_p11 = pnand %p735_p8, %p111_p10  ;;  %s123_s29 = sshll.u32 %s1190_s28, 4  ;;  %s124_s29 = int_to_ptr.vmem [resolvable:$true] %s123_s29 }
  0x1a   : > { %1534 = sst [smem:[#allocation13_spill]] %s1533_s26  ;;  %s1537_s1 = sld [smem:[#allocation16_spill]] }
  0x1b   : > { %s1535_s27 = scalar_select %p1292_p11, 1, 0 }
  0x1c   : > { %p872_p12 = pneg %p1292_p11 }
  0x1e   : > { %p1300_p13 = pnand %p872_p12, %p1267_p1 }
  0x20   : > { %s1004_s5 = scalar_lea.hbm %s1537_s1, 1024  ;;  %p1006_p2 = pneg %p1300_p13 }
  0x21   : > { %p1005_p0 = scmp.ne.s32.totalorder %s1537_s1, %s1004_s5  ;;  %p1011_p6 = scmp.lt.u32.totalorder %s1004_s5, %s1537_s1 }
  0x23   : > { %p1007_p4 = pnand %p1006_p2, %p1005_p0 }
  0x25   : > { %p1008_p5 = pneg %p1007_p4 }
  0x27   : > { %p1013_p8 = pnand %p1011_p6, %p1008_p5 }
  0x29   : > { %1016 = shalt.err (!%p1013_p8)
}
  0x2a   : > { %s1017_s20 = scalar_lea.vmem %s124_s29, 1024  ;;  %p1025_p7 = scmp.lt.s32.totalorder %s124_s29, %s124_s29 }
  0x2b   : > { %p1018_p10 = scmp.ne.s32.totalorder %s124_s29, %s1017_s20  ;;  %p1026_p1 = scmp.lt.s32.totalorder %s1017_s20, %s1017_s20 }
  0x2d   : > { %p1020_p12 = pnand %p1018_p10, %p1006_p2  ;;  %p1027_p3 = por %p1026_p1, %p1025_p7 }
  0x2f   : > { %p1021_p9 = pneg %p1020_p12 }
  0x31   : > { %p1028_p11 = pnand %p1027_p3, %p1021_p9 }
  0x33   : > { %1031 = shalt.err (!%p1028_p11)
}
  0x34   : > { %s1520_s21 = smov 64   ;;  %s1521_s28 = smov 4  }
  0x35   : > { %875 = dma.hbm_to_vmem [thread:$0]  (!%p1300_p13), %s1537_s1, 1024, %s124_s29, [#allocation7], %s1520_s21, %s1520_s21, %s1521_s28  }
  0x36   : > { %s28_s5 = sadd.s32 1, %s1180_s17  ;;  %s31_s6 = sadd.s32 1, %s1184_s18 }
  0x37   : > { %p29_p1 = scmp.ge.s32.totalorder %s28_s5, 2  ;;  %s40_s7 = sadd.s32 1, %s1168_s14 }
  0x38   : > { %p47_p3 = scmp.ne.s32.totalorder %s1168_s14, %s1164_s13  ;;  %p48_p7 = scmp.eq.s32.totalorder %s1188_s19, 0 }
  0x39   : > { %s1565_s5 = smov (%p29_p1, %s28_s5), 0  ;;  %s1567_s6 = smov (!%p29_p1, %s31_s6), %s1184_s18 }
  0x3a   : > { %1538 = sst [smem:[#allocation14_spill]] %s1565_s5  ;;  %s36_s30 = ssub.s32 %s1180_s17, %s1565_s5 }
  0x3b   : > { %p33_p9 = scmp.ge.s32.totalorder %s1567_s6, 2  ;;  %p885_p11 = scmp.lt.s32.totalorder %s1188_s19, 4 }
  0x3c   : > { %p1335_p13 = por %p48_p7, %p47_p3  ;;  %s137_s8 = sand.u32 1, %s1168_s14  }
  0x3d   : > { %s1569_s6 = smov (%p33_p9, %s1567_s6), 0  ;;  %s738_s12 = sshll.u32 %s137_s8, 7 }
  0x3e   : > { %1540 = sst [smem:[#allocation15_spill]] %s1569_s6  ;;  %s35_s20 = ssub.s32 %s1184_s18, %s1569_s6 }
  0x3f   : > { %s37_s3 = sor.u32 %s36_s30, %s35_s20  ;;  %p85_p0 = scmp.eq.s32.totalorder %s35_s20, 0 }
  0x40   : > { %p38_p2 = scmp.eq.s32.totalorder %s37_s3, 0  ;;  %s739_s4 = sshll.u32 %s1180_s17, 5 }
  0x41   : > { %s1348_s21 = scalar_select %p85_p0, %s1156_s11, %s87_s23  }
  0x42   : > { %s1351_s28 = scalar_select %p38_p2, %s1168_s14, %s40_s7  }
  0x43   : > { %s740_s1 = sshll.u32 %s1184_s18, 6  ;;  %s141_s5 = scalar_lea.vmem [#allocation3], %s738_s12 }
  0x44   : > { %s150_s26 = sshll.u32 %s141_s5, 4  ;;  %s147_s9 = sadd.s32 %s740_s1, %s739_s4  ;;  %s1354_s26 = int_to_ptr.vmem [resolvable:$true] %s150_s26 }
  0x45   : > { %s741_s2 = sshll.u32 %s147_s9, 6  ;;  %p1360_p4 = pnand %p885_p11, %p1335_p13 }
  0x46   : > { %s1367_s23 = scalar_lea.hbm %s1512_s0, %s741_s2  ;;  %s1369_s1 = scalar_lea.sflag [#allocation4], %s137_s8 }
  0x47   : > { %s1032_s9 = scalar_lea.hbm %s1367_s23, 2048  ;;  %p1034_p6 = pneg %p1360_p4 }
  0x48   : > { %p1033_p5 = scmp.ne.s32.totalorder %s1367_s23, %s1032_s9  ;;  %s1037_s29 = scalar_lea.hbm %s1512_s0, 8192 }
  0x49   : > { %p1038_p12 = scmp.lt.u32.totalorder %s1367_s23, %s1512_s0  ;;  %p1039_p1 = scmp.lt.u32.totalorder %s1037_s29, %s1032_s9 }
  0x4a   : > { %p1035_p8 = pnand %p1034_p6, %p1033_p5  ;;  %p1041_p7 = scmp.lt.u32.totalorder %s1032_s9, %s1367_s23 }
  0x4b   : > { %p1040_p3 = por %p1039_p1, %p1038_p12 }
  0x4c   : > { %p1036_p10 = pneg %p1035_p8 }
  0x4d   : > { %p1042_p9 = por %p1041_p7, %p1040_p3 }
  0x4f   : > { %p1043_p11 = pnand %p1042_p9, %p1036_p10 }
  0x51   : > { %1046 = shalt.err (!%p1043_p11)
}
  0x52   : > { %s1047_s8 = scalar_lea.vmem %s1354_s26, 2048  ;;  %s1193_s3 = smov [#allocation3]  }
  0x53   : > { %p1048_p13 = scmp.ne.s32.totalorder %s1354_s26, %s1047_s8  ;;  %s1052_s4 = sshll.u32 %s1193_s3, 4  ;;  %s1053_s4 = int_to_ptr.vmem [resolvable:$false] %s1052_s4 }
  0x54   : > { %s1054_s30 = scalar_lea.vmem %s1053_s4, 4096  ;;  %p1055_p5 = scmp.lt.s32.totalorder %s1354_s26, %s1053_s4 }
  0x55   : > { %p1050_p0 = pnand %p1048_p13, %p1034_p6  ;;  %p1056_p8 = scmp.lt.s32.totalorder %s1054_s30, %s1047_s8 }
  0x57   : > { %p1051_p2 = pneg %p1050_p0  ;;  %p1057_p12 = por %p1056_p8, %p1055_p5 }
  0x59   : > { %p1058_p1 = pnand %p1057_p12, %p1051_p2 }
  0x5b   : > { %1061 = shalt.err (!%p1058_p1)
}
  0x5c   : > { %s1542_s20 = smov 4   ;;  %s1543_s9 = smov 64  }
  0x5d   : > { %879 = dma.hbm_to_vmem [thread:$0]  (!%p1360_p4), %s1367_s23, 2048, %s1354_s26, %s1369_s1, %s1543_s9, %s1543_s9, %s1542_s20  }
  0x5e   : > { %p1544_p6 = scmp.ne.s32.totalorder %s1535_s27, 0 }
  0x5f   : > { %s164_s5 = sand.u32 (!%p1544_p6), 1, %s1164_s13   ;;  %p1545_p10 = scmp.ne.s32.totalorder (!%p1544_p6), %s1531_s24, 0 }
  0x60   : > { %162 = sbr.rel (%p1544_p6) target bundleno = 465 (0x1d1), region = 28  ;;  %s743_s7 = sshll.u32 (!%p1544_p6), %s164_s5, 7 }
  0x61   : > { %s165_s29 = scalar_lea.sflag (!%p1544_p6), [#allocation4], %s164_s5  ;;  %s1403_s2 = scalar_lea.vmem (!%p1544_p6), [#allocation3], %s743_s7 }
  0x67   : > { %1135 = dma.done.wait (%p1545_p10), %s165_s29, 2048  }
  0x68   : > { %1137 = vsyncadd (%p1545_p10), %s165_s29, 4294965248  ;;  %p1546_p3 = scmp.ne.s32.totalorder %s1530_s22, 0 }
  0x6a   : > { %1139 = dma.done.wait (%p1546_p3), [#allocation7], 1024  }
  0x6b   : > { %1141 = vsyncadd (%p1546_p3), [#allocation7], 4294966272  ;;  %s190_s26 = sand.u32 1, %s1152_s10   ;;  %p746_p4 = scmp.ne.s32.totalorder %s1172_s15, 0 }
  0x6c   : > { %s1416_s27 = sshll.u32 %s190_s26, 3  ;;  %v1194_v0 = vmov (!%p746_p4), 0.0  }
  0x6d   : > { %s192_s6 = scalar_lea.vmem [#allocation8], %s1416_s27  ;;  %198 = sbr.rel (%p746_p4) target bundleno = 116 (0x74), region = 40  ;;  %199 = vst [vmem:[#allocation2] sm:$0xff] (!%p746_p4), %v1194_v0 }
  0x74 PF: > { %v980_v1 = vld [vmem:[#allocation6] sm:$0xff]   ;;  %v981_v2 = vld [vmem:[#allocation6 + $0x8] sm:$0xff]   ;;  %v982_v3 = vld [vmem:[#allocation6 + $0x10] sm:$0xff]   ;;  %p771_p7 = scmp.ne.s32.totalorder %s1172_s15, 1 }
  0x75   : > { %800 = vmatprep.subr.bf16.mxu0 %v980_v1  ;;  %848 = vmatprep.subr.bf16.mxu1 %v980_v1  ;;  %v983_v4 = vld [vmem:[#allocation6 + $0x18] sm:$0xff]   ;;  %v988_v5 = vld [vmem:[%s1403_s2] sm:$0xff]   ;;  %v985_v7 = vld [vmem:[#allocation6 + $0x28] sm:$0xff]  }
  0x76   : > { %801 = vmatpush3.bf16.msra.mxu0 %v980_v1  ;;  %856 = vmatpush3.bf16.msra.mxu1 %v980_v1  ;;  %v984_v6 = vld [vmem:[#allocation6 + $0x20] sm:$0xff]   ;;  %v986_v9 = vld [vmem:[#allocation6 + $0x30] sm:$0xff]   ;;  %v987_v10 = vld [vmem:[#allocation6 + $0x38] sm:$0xff]  }
  0x77   : > { %802 = vmatprep.subr.bf16.mxu0 %v981_v2  ;;  %849 = vmatprep.subr.bf16.mxu1 %v981_v2  ;;  %v996_v8 = vld [vmem:[%s1403_s2 + $0x40] sm:$0xff]   ;;  %v989_v11 = vld [vmem:[%s1403_s2 + $0x8] sm:$0xff]   ;;  %v990_v13 = vld [vmem:[%s1403_s2 + $0x10] sm:$0xff]  }
  0x78   : > { %816 = vmatprep.mubr.bf16.mxu0 %v988_v5  ;;  %832 = vmatprep.mubr.bf16.mxu1 %v996_v8  ;;  %v997_v12 = vld [vmem:[%s1403_s2 + $0x48] sm:$0xff]   ;;  %v998_v14 = vld [vmem:[%s1403_s2 + $0x50] sm:$0xff]   ;;  %v991_v15 = vld [vmem:[%s1403_s2 + $0x18] sm:$0xff]  }
  0x79   : > { %v999_v16 = vld [vmem:[%s1403_s2 + $0x58] sm:$0xff]   ;;  %v992_v17 = vld [vmem:[%s1403_s2 + $0x20] sm:$0xff]   ;;  %v993_v19 = vld [vmem:[%s1403_s2 + $0x28] sm:$0xff]  }
  0x7a   : > { %803 = vmatpush3.bf16.msra.mxu0 %v981_v2  ;;  %857 = vmatpush3.bf16.msra.mxu1 %v981_v2  ;;  %v1000_v18 = vld [vmem:[%s1403_s2 + $0x60] sm:$0xff]   ;;  %v1001_v20 = vld [vmem:[%s1403_s2 + $0x68] sm:$0xff]   ;;  %v994_v21 = vld [vmem:[%s1403_s2 + $0x30] sm:$0xff]  }
  0x7b   : > { %804 = vmatprep.subr.bf16.mxu0 %v982_v3  ;;  %850 = vmatprep.subr.bf16.mxu1 %v982_v3  ;;  %v1002_v22 = vld [vmem:[%s1403_s2 + $0x70] sm:$0xff]   ;;  %v995_v23 = vld [vmem:[%s1403_s2 + $0x38] sm:$0xff]  }
  0x7c   : > { %v1003_v24 = vld [vmem:[%s1403_s2 + $0x78] sm:$0xff]  }
  0x7e   : > { %805 = vmatpush3.bf16.msra.mxu0 %v982_v3  ;;  %858 = vmatpush3.bf16.msra.mxu1 %v982_v3 }
  0x7f   : > { %806 = vmatprep.subr.bf16.mxu0 %v983_v4  ;;  %851 = vmatprep.subr.bf16.mxu1 %v983_v4 }
  0x82   : > { %807 = vmatpush3.bf16.msra.mxu0 %v983_v4  ;;  %859 = vmatpush3.bf16.msra.mxu1 %v983_v4 }
  0x83   : > { %808 = vmatprep.subr.bf16.mxu0 %v984_v6  ;;  %852 = vmatprep.subr.bf16.mxu1 %v984_v6 }
  0x86   : > { %809 = vmatpush3.bf16.msra.mxu0 %v984_v6  ;;  %860 = vmatpush3.bf16.msra.mxu1 %v984_v6 }
  0x87   : > { %810 = vmatprep.subr.bf16.mxu0 %v985_v7  ;;  %853 = vmatprep.subr.bf16.mxu1 %v985_v7 }
  0x8a   : > { %811 = vmatpush3.bf16.msra.mxu0 %v985_v7  ;;  %861 = vmatpush3.bf16.msra.mxu1 %v985_v7 }
  0x8b   : > { %812 = vmatprep.subr.bf16.mxu0 %v986_v9  ;;  %854 = vmatprep.subr.bf16.mxu1 %v986_v9 }
  0x8e   : > { %813 = vmatpush3.bf16.msra.mxu0 %v986_v9  ;;  %862 = vmatpush3.bf16.msra.mxu1 %v986_v9 }
  0x8f   : > { %814 = vmatprep.subr.bf16.mxu0 %v987_v10  ;;  %855 = vmatprep.subr.bf16.mxu1 %v987_v10 }
  0x92   : > { %815 = vmatpush3.bf16.msra.mxu0 %v987_v10  ;;  %863 = vmatpush3.bf16.msra.mxu1 %v987_v10 }
  0x95   : > { %817 = vmatmul.mubr.bf16.vlgmr.msra.gmra.mrb[0].mxu0 %v989_v11  ;;  %833 = vmatmul.mubr.bf16.vlgmr.msra.gmra.mrb[0].mxu1 %v997_v12 }
  0x96   : > { %820 = vmatprep.mubr.bf16.mxu0 %v990_v13  ;;  %836 = vmatprep.mubr.bf16.mxu1 %v998_v14 }
  0x9d   : > { %821 = vmatmul.mubr.bf16.gmra.mrb[4].mxu0 %v991_v15  ;;  %837 = vmatmul.mubr.bf16.gmra.mrb[4].mxu1 %v999_v16 }
  0x9e   : > { %824 = vmatprep.mubr.bf16.mxu0 %v992_v17  ;;  %840 = vmatprep.mubr.bf16.mxu1 %v1000_v18 }
  0xa5   : > { %825 = vmatmul.mubr.bf16.gmra.mrb[8].mxu0 %v993_v19  ;;  %841 = vmatmul.mubr.bf16.gmra.mrb[8].mxu1 %v1001_v20 }
  0xa6   : > { %828 = vmatprep.mubr.bf16.mxu0 %v994_v21  ;;  %844 = vmatprep.mubr.bf16.mxu1 %v1002_v22 }
  0xad   : > { %829 = vmatmul.mubr.bf16.gmra.mrb[12].mxu0 %v995_v23  ;;  %845 = vmatmul.mubr.bf16.gmra.mrb[12].mxu1 %v1003_v24 }
 0x168   : > { %v818_v25 = vpop.f32.mrb[0].mxu0  ;;  %v1436_v26 = vpop.f32.mrb[0].mxu1 }
 0x169   : > { %v426_v27 = vpop.f32.mrb[1].mxu0  ;;  %v490_v28 = vpop.f32.mrb[1].mxu1  ;;  %v555_v35 = vmax.f32 %v818_v25, 0.0 }
 0x16a   : > { %v819_v29 = vpop.f32.mrb[2].mxu0  ;;  %v1438_v30 = vpop.f32.mrb[2].mxu1  ;;  %v553_v33 = vmax.f32 %v426_v27, 0.0  ;;  %v569_v23 = vmax.f32 %v490_v28, 0.0 }
 0x16b   : > { %v429_v31 = vpop.f32.mrb[3].mxu0  ;;  %v493_v32 = vpop.f32.mrb[3].mxu1  ;;  %v556_v37 = vmax.f32 %v819_v29, 0.0  ;;  %v571_v29 = vmax.f32 %v1436_v26, 0.0 }
 0x16c   : > { %v554_v34 = vmax.f32 %v429_v31, 0.0  ;;  %v570_v27 = vmax.f32 %v493_v32, 0.0 }
 0x16e   : > { %v586_v36 = vadd.f32 %v554_v34, %v553_v33  ;;  %v572_v33 = vmax.f32 %v1438_v30, 0.0 }
 0x170   : > { %v587_v38 = vadd.f32 %v586_v36, %v555_v35  ;;  %v822_v39 = vpop.f32.mrb[4].mxu0  ;;  %v1440_v40 = vpop.f32.mrb[4].mxu1 }
 0x171   : > { %v442_v41 = vpop.f32.mrb[5].mxu0  ;;  %v506_v42 = vpop.f32.mrb[5].mxu1  ;;  %v559_v51 = vmax.f32 %v822_v39, 0.0  ;;  %v575_v39 = vmax.f32 %v1440_v40, 0.0  ;;  %v585_v40 = vld [vmem:[#allocation2] sm:$0xff] }
 0x172   : > { %v557_v43 = vmax.f32 %v442_v41, 0.0  ;;  %v588_v44 = vadd.f32 %v587_v38, %v556_v37  ;;  %v823_v45 = vpop.f32.mrb[6].mxu0  ;;  %v839_v46 = vpop.f32.mrb[6].mxu1  ;;  %v573_v35 = vmax.f32 %v506_v42, 0.0 }
 0x173   : > { %v445_v47 = vpop.f32.mrb[7].mxu0  ;;  %v509_v48 = vpop.f32.mrb[7].mxu1  ;;  %v560_v53 = vmax.f32 %v823_v45, 0.0 }
 0x174   : > { %v589_v49 = vadd.f32 %v588_v44, %v557_v43  ;;  %v558_v50 = vmax.f32 %v445_v47, 0.0  ;;  %v574_v38 = vmax.f32 %v509_v48, 0.0  ;;  %v576_v43 = vmax.f32 %v839_v46, 0.0 }
 0x176   : > { %v590_v52 = vadd.f32 %v589_v49, %v558_v50 }
 0x178   : > { %v591_v54 = vadd.f32 %v590_v52, %v559_v51  ;;  %v826_v55 = vpop.f32.mrb[8].mxu0  ;;  %v842_v56 = vpop.f32.mrb[8].mxu1 }
 0x179   : > { %v458_v57 = vpop.f32.mrb[9].mxu0  ;;  %v522_v58 = vpop.f32.mrb[9].mxu1  ;;  %v563_v3 = vmax.f32 %v826_v55, 0.0  ;;  %v579_v32 = vmax.f32 %v842_v56, 0.0 }
 0x17a   : > { %v561_v59 = vmax.f32 %v458_v57, 0.0  ;;  %v592_v60 = vadd.f32 %v591_v54, %v560_v53  ;;  %v827_v61 = vpop.f32.mrb[10].mxu0  ;;  %v843_v62 = vpop.f32.mrb[10].mxu1  ;;  %v577_v45 = vmax.f32 %v522_v58, 0.0 }
 0x17b   : > { %v461_v63 = vpop.f32.mrb[11].mxu0  ;;  %v525_v0 = vpop.f32.mrb[11].mxu1  ;;  %v564_v5 = vmax.f32 %v827_v61, 0.0  ;;  %v580_v26 = vmax.f32 %v843_v62, 0.0 }
 0x17c   : > { %v593_v1 = vadd.f32 %v592_v60, %v561_v59  ;;  %v562_v2 = vmax.f32 %v461_v63, 0.0  ;;  %v578_v49 = vmax.f32 %v525_v0, 0.0 }
 0x17e   : > { %v594_v4 = vadd.f32 %v593_v1, %v562_v2 }
 0x180   : > { %v595_v6 = vadd.f32 %v594_v4, %v563_v3  ;;  %v830_v7 = vpop.f32.mrb[12].mxu0  ;;  %v846_v8 = vpop.f32.mrb[12].mxu1 }
 0x181   : > { %v474_v9 = vpop.f32.mrb[13].mxu0  ;;  %v538_v10 = vpop.f32.mrb[13].mxu1  ;;  %v567_v19 = vmax.f32 %v830_v7, 0.0  ;;  %v583_v54 = vmax.f32 %v846_v8, 0.0 }
 0x182   : > { %v565_v11 = vmax.f32 %v474_v9, 0.0  ;;  %v596_v12 = vadd.f32 %v595_v6, %v564_v5  ;;  %v831_v13 = vpop.f32.mrb[14].mxu0  ;;  %v847_v14 = vpop.f32.mrb[14].mxu1  ;;  %v581_v52 = vmax.f32 %v538_v10, 0.0 }
 0x183   : > { %v477_v15 = vpop.f32.mrb[15].mxu0  ;;  %v541_v16 = vpop.f32.mrb[15].mxu1  ;;  %v568_v21 = vmax.f32 %v831_v13, 0.0  ;;  %v584_v48 = vmax.f32 %v847_v14, 0.0 }
 0x184   : > { %v597_v17 = vadd.f32 %v596_v12, %v565_v11  ;;  %v566_v18 = vmax.f32 %v477_v15, 0.0  ;;  %v582_v42 = vmax.f32 %v541_v16, 0.0 }
 0x186   : > { %v598_v20 = vadd.f32 %v597_v17, %v566_v18 }
 0x188   : > { %v599_v22 = vadd.f32 %v598_v20, %v567_v19 }
 0x18a   : > { %v600_v24 = vadd.f32 %v599_v22, %v568_v21 }
 0x18c   : > { %v601_v25 = vadd.f32 %v600_v24, %v569_v23 }
 0x18e   : > { %v602_v31 = vadd.f32 %v601_v25, %v570_v27 }
 0x190   : > { %v603_v34 = vadd.f32 %v602_v31, %v571_v29 }
 0x192   : > { %v604_v36 = vadd.f32 %v603_v34, %v572_v33 }
 0x194   : > { %v605_v37 = vadd.f32 %v604_v36, %v573_v35 }
 0x196   : > { %v606_v41 = vadd.f32 %v605_v37, %v574_v38 }
 0x198   : > { %v607_v44 = vadd.f32 %v606_v41, %v575_v39 }
 0x19a   : > { %v608_v28 = vadd.f32 %v607_v44, %v576_v43 }
 0x19c   : > { %v609_v47 = vadd.f32 %v608_v28, %v577_v45 }
 0x19e   : > { %v610_v50 = vadd.f32 %v609_v47, %v578_v49 }
 0x1a0   : > { %v611_v51 = vadd.f32 %v610_v50, %v579_v32 }
 0x1a2   : > { %v612_v30 = vadd.f32 %v611_v51, %v580_v26 }
 0x1a4   : > { %v613_v53 = vadd.f32 %v612_v30, %v581_v52 }
 0x1a6   : > { %v614_v55 = vadd.f32 %v613_v53, %v582_v42 }
 0x1a8   : > { %v615_v57 = vadd.f32 %v614_v55, %v583_v54  ;;  %622 = sbr.rel (%p771_p7) target bundleno = 439 (0x1b7), region = 44 }
 0x1aa   : > { %v616_v59 = vadd.f32 %v615_v57, %v584_v48 }
 0x1ac   : > { %v617_v46 = vadd.f32 %v616_v59, %v585_v40 }
 0x1ae   : > { %618 = vst [vmem:[#allocation2] sm:$0xff] %v617_v46 }
 0x1b5   : > { %v623_v58 = vld [vmem:[#allocation2] sm:$0xff] }
 0x1b6   : > { %624 = vst [vmem:[%s192_s6] sm:$0xff] %v623_v58 }
 0x1b7 PF: > { %s773_s22 = sshll.u32 %s1176_s16, 7  ;;  %s1547_s1 = sld [smem:[#allocation17_spill]] }
 0x1b8   : > { %s639_s8 = sshll.u32 %s192_s6, 4  ;;  %s626_s15 = scalar_lea.sflag [#allocation5], %s190_s26  ;;  %s640_s8 = int_to_ptr.vmem [resolvable:$true] %s639_s8 }
 0x1b9   : > { %s1062_s3 = scalar_lea.vmem %s640_s8, 128  ;;  %p1548_p11 = scmp.ne.s32.totalorder %s1532_s25, 0 }
 0x1ba   : > { %p1063_p9 = scmp.ne.s32.totalorder %s640_s8, %s1062_s3  ;;  %s1195_s4 = smov [#allocation8]  }
 0x1bb   : > { %s1066_s30 = sshll.u32 %s1195_s4, 4  ;;  %s1067_s30 = int_to_ptr.vmem [resolvable:$false] %s1066_s30 }
 0x1bc   : > { %p1064_p13 = pnand %p1063_p9, %p1548_p11  ;;  %s1068_s20 = scalar_lea.vmem %s1067_s30, 256 }
 0x1bd   : > { %s1452_s12 = scalar_lea.hbm %s1547_s1, %s773_s22  ;;  %p1069_p2 = scmp.lt.s32.totalorder %s640_s8, %s1067_s30 }
 0x1be   : > { %p1065_p0 = pneg %p1064_p13  ;;  %p1070_p5 = scmp.lt.s32.totalorder %s1068_s20, %s1062_s3 }
 0x1c0   : > { %p1071_p8 = por %p1070_p5, %p1069_p2 }
 0x1c2   : > { %p1072_p12 = pnand %p1071_p8, %p1065_p0 }
 0x1c4   : > { %1075 = shalt.err (!%p1072_p12)
}
 0x1c5   : > { %s1076_s16 = scalar_lea.hbm %s1452_s12, 128  ;;  %s1080_s7 = scalar_lea.hbm %s1547_s1, 256 }
 0x1c6   : > { %p1077_p1 = scmp.ne.s32.totalorder %s1452_s12, %s1076_s16  ;;  %p1081_p3 = scmp.lt.u32.totalorder %s1452_s12, %s1547_s1 }
 0x1c7   : > { %p1082_p4 = scmp.lt.u32.totalorder %s1080_s7, %s1076_s16  ;;  %p1084_p9 = scmp.lt.u32.totalorder %s1076_s16, %s1452_s12 }
 0x1c8   : > { %p1078_p6 = pnand %p1077_p1, %p1548_p11 }
 0x1c9   : > { %p1083_p7 = por %p1082_p4, %p1081_p3 }
 0x1ca   : > { %p1079_p10 = pneg %p1078_p6 }
 0x1cb   : > { %p1085_p13 = por %p1084_p9, %p1083_p7 }
 0x1cd   : > { %p1086_p0 = pnand %p1085_p13, %p1079_p10 }
 0x1cf   : > { %1089 = shalt.err (!%p1086_p0)
}
 0x1d0   : > { %870 = dma.vmem_to_hbm [thread:$0]  (%p1548_p11), %s640_s8, 128, %s1452_s12, %s626_s15  }
 0x1d1 PF: > { %s1549_s26 = sld [smem:[#allocation12_spill]]  ;;  %s1550_s27 = sld [smem:[#allocation13_spill]] }
 0x1d2   : > { %p887_p2 = scmp.ge.s32.totalorder %s1188_s19, 2 }
 0x1d7   : > { %s651_s6 = sand.u32 1, %s1549_s26   ;;  %p1551_p5 = scmp.ne.s32.totalorder %s1550_s27, 0 }
 0x1d8   : > { %s652_s22 = scalar_lea.sflag [#allocation5], %s651_s6 }
 0x1d9   : > { %p881_p8 = pnand %p887_p2, %p1551_p5 }
 0x1db   : > { %1143 = dma.done.wait (!%p881_p8), %s652_s22, 128  }
 0x1dc   : > { %1145 = vsyncadd (!%p881_p8), %s652_s22, 4294967168  ;;  %s19_s19 = sadd.s32 1, %s1188_s19   ;;  %s1552_s25 = sld [smem:[#allocation14_spill]] }
 0x1dd   : > { %p16_p12 = scmp.ge.s32.totalorder %s19_s19, 6   ;;  %s1553_s24 = sld [smem:[#allocation15_spill]] }
 0x1de   : > { %s1554_s9 = smov %s1152_s10  ;;  %s1555_s10 = smov %s1156_s11 }
 0x1df   : > { %s1556_s11 = smov %s1348_s21  ;;  %s1557_s12 = smov %s1164_s13 }
 0x1e0   : > { %s1558_s13 = smov %s1168_s14  ;;  %s1559_s14 = smov %s1351_s28 }
 0x1e1   : > { %s1560_s15 = smov %s1180_s17  ;;  %s1561_s16 = smov %s1184_s18 }
 0x1e2   : > { %s1562_s17 = smov %s1552_s25  ;;  %18 = sbr.rel (!%p16_p12) target bundleno = 13 (0xd), region = 85 }
 0x1e3   : > { %s1563_s18 = smov %s1553_s24 }
 0x1e9   :  { %657 = vsyncpa [#allocation4], 1 }
 0x1ea   :  { %659 = vsyncpa [#allocation4 + $0x1], 1 }
 0x1eb   :  { %660 = vsyncpa [#allocation7], 1 }
 0x1ec   :  { %661 = vsyncpa [#allocation5], 1 }
 0x1ed   :  { %663 = vsyncpa [#allocation5 + $0x1], 1 }

</bundles_post_ra>
